<compile_context>
chip_gen: v7x
topology: tpu7x:2x2x1
jax: 0.10.0
libtpu: 0.0.40
codegen_flags: <defaults>
</compile_context>

<pallas_src>
import functools
import math

import jax
import jax.numpy as jnp
from jax.experimental import pallas as pl
from jax.experimental.pallas import tpu as pltpu


# Below this Cin we build an explicit im2col operand so the MXU sees a full
# K*Cin-deep contraction instead of K tiny Cin-deep passes.
_STACK_CIN_THRESHOLD = 32


def _unit_tcn_kernel_stacked(x_ref, w_ref, sb_ref, o_ref, xcol_ref, *,
                             kernel_size, c_in, num_point):
    """Small-Cin path: one (Cout, K*Cin) x (K*Cin, rows) matmul per sample.

    x_ref   : (B, Cin, T_pad*V)   bf16
    w_ref   : (Cout, K*Cin)       bf16   row index = k*Cin + ci
    sb_ref  : (Cout, 2)           f32    col 0 = fused BN scale, col 1 = bias
    o_ref   : (B, Cout, T_out*V)  lane-dense output
    xcol_ref: (K*Cin, T_out*V)    f32 scratch (im2col operand, aligned stores)
    """
    batch = x_ref.shape[0]
    rows = o_ref.shape[2]
    scale = sb_ref[:, 0:1]                      # (Cout, 1) f32
    bias = sb_ref[:, 1:2]                       # (Cout, 1) f32
    for b in range(batch):                      # static unroll, B is small
        xb = x_ref[b]                           # (Cin, T_pad*V) bf16
        for k in range(kernel_size):            # static unroll, K ~ 9
            start = k * num_point               # contiguous tap window
            xcol_ref[k * c_in:(k + 1) * c_in, :] = (
                xb[:, start:start + rows].astype(jnp.float32))
        acc = jnp.dot(w_ref[...],
                      xcol_ref[...].astype(jnp.bfloat16),
                      preferred_element_type=jnp.float32)      # (Cout, rows)
        o_ref[b, :, :] = (acc * scale + bias).astype(o_ref.dtype)


def _unit_tcn_kernel_ktap(x_ref, w_ref, sb_ref, o_ref, acc_ref, *,
                          kernel_size, num_point):
    """Large-Cin path: K per-tap dots (each already full contraction depth)
    accumulated into an explicit f32 VMEM scratch accumulator.

    x_ref  : (B, Cin, T_pad*V)   bf16
    w_ref  : (K, Cout, Cin)      bf16
    sb_ref : (Cout, 2)           f32
    o_ref  : (B, Cout, T_out*V)
    acc_ref: (Cout, T_out*V)     f32 scratch accumulator
    """
    batch = x_ref.shape[0]
    rows = o_ref.shape[2]
    scale = sb_ref[:, 0:1]
    bias = sb_ref[:, 1:2]
    for b in range(batch):
        xb = x_ref[b]                                          # (Cin, T_pad*V)
        acc_ref[...] = jnp.dot(w_ref[0], xb[:, 0:rows],
                               preferred_element_type=jnp.float32)
        for k in range(1, kernel_size):
            start = k * num_point
            acc_ref[...] += jnp.dot(w_ref[k], xb[:, start:start + rows],
                                    preferred_element_type=jnp.float32)
        o_ref[b, :, :] = (acc_ref[...] * scale + bias).astype(o_ref.dtype)


def init_unit_tcn_params(key, in_channels, out_channels, kernel_size):
    """Deterministic init matching the PyTorch module's __init__."""
    fan_out = out_channels * kernel_size * 1          # kaiming_normal, fan_out
    std = math.sqrt(2.0 / fan_out)
    conv_w = std * jax.random.normal(
        key, (out_channels, in_channels, kernel_size, 1), jnp.float32)
    return {
        "conv_w": conv_w,                                      # (Cout, Cin, K, 1)
        "conv_b": jnp.zeros((out_channels,), jnp.float32),
        "bn_gamma": jnp.ones((out_channels,), jnp.float32),    # bn_init(bn, 1)
        "bn_beta": jnp.zeros((out_channels,), jnp.float32),
        "bn_mean": jnp.zeros((out_channels,), jnp.float32),
        "bn_var": jnp.ones((out_channels,), jnp.float32),
    }


def unit_tcn_forward(x_nchw, params, keep_prob, A, *, kernel_size=9, stride=1,
                     block_batch=None):
    """Forward of unit_tcn: bn(conv(x)) followed by DropBlock_Ske/DropBlockT_1d."""
    N, Cin, T, V = x_nchw.shape
    pad = (kernel_size - 1) // 2
    eps = 1e-5

    w4 = params["conv_w"]                           # (Cout, Cin, K, 1)
    Cout = w4.shape[0]

    # Fold conv bias + eval-mode BatchNorm into per-channel (scale, bias), f32.
    # TODO(synk): training-mode batch-statistics BN (cross-batch reduction) not
    # implemented; eval-mode running-stats BN is fused into the kernel instead.
    scale = params["bn_gamma"] / jnp.sqrt(params["bn_var"] + eps)
    bias = (params["conv_b"] - params["bn_mean"]) * scale + params["bn_beta"]
    sb = jnp.stack([scale, bias], axis=1).astype(jnp.float32)  # (Cout, 2)

    # NCHW stays channel-major: no transposes, just a temporal pad and a free
    # (T_pad, V) -> T_pad*V reshape.  Activations go to bf16 for HBM bandwidth.
    # TODO(synk): fold the temporal halo into the kernel (masked edge taps) to
    # drop this extra jnp.pad HBM pass.
    x_pad = jnp.pad(x_nchw, ((0, 0), (0, 0), (pad, pad), (0, 0)))
    T_pad = T + 2 * pad
    x_flat = x_pad.reshape(N, Cin, T_pad * V).astype(jnp.bfloat16)

    # The kernel always computes the stride-1 output; stride > 1 is handled by
    # subsampling below (see TODO).
    T1 = T_pad - kernel_size + 1
    rows = T1 * V

    stacked = Cin < _STACK_CIN_THRESHOLD
    if stacked:
        # (Cout, K*Cin) with row index k*Cin + ci.
        w_arg = jnp.transpose(w4[..., 0], (0, 2, 1)).reshape(
            Cout, kernel_size * Cin).astype(jnp.bfloat16)
        w_spec = pl.BlockSpec((Cout, kernel_size * Cin), lambda n: (0, 0))
        scratch = [pltpu.VMEM((kernel_size * Cin, rows), jnp.float32)]
        kernel = functools.partial(_unit_tcn_kernel_stacked,
                                   kernel_size=kernel_size, c_in=Cin,
                                   num_point=V)
    else:
        w_arg = jnp.transpose(w4[..., 0], (2, 0, 1)).astype(jnp.bfloat16)  # (K, Cout, Cin)
        w_spec = pl.BlockSpec((kernel_size, Cout, Cin), lambda n: (0, 0, 0))
        scratch = [pltpu.VMEM((Cout, rows), jnp.float32)]
        kernel = functools.partial(_unit_tcn_kernel_ktap,
                                   kernel_size=kernel_size, num_point=V)

    # Samples per grid step: amortize the ~0.35us per-step overhead with bigger
    # tiles, but keep >= 2 grid steps when possible so both v7x TCs get work.
    # TODO(synk): add a T-tile grid axis (with halo) for very long sequences so
    # per-buffer VMEM footprint stays small on v7x's 64 MiB VMEM.
    if block_batch is None:
        per_sample = Cin * T_pad * V * 2 + Cout * rows * x_nchw.dtype.itemsize
        block_batch = max(1, min(N, (2 * 1024 * 1024) // max(per_sample, 1)))
        while block_batch > 1 and (N % block_batch != 0 or N // block_batch < 2):
            block_batch -= 1
    B = block_batch
    assert N % B == 0, (N, B)
    grid = (N // B,)

    cost = pl.CostEstimate(
        flops=2 * N * T1 * V * kernel_size * Cin * Cout,
        transcendentals=0,
        bytes_accessed=(x_flat.size * 2 + w_arg.size * 2 + sb.size * 4
                        + N * Cout * rows * x_nchw.dtype.itemsize))

    out_flat = pl.pallas_call(
        kernel,
        out_shape=jax.ShapeDtypeStruct((N, Cout, rows), x_nchw.dtype),
        grid=grid,
        in_specs=[
            pl.BlockSpec((B, Cin, T_pad * V), lambda n: (n, 0, 0)),
            w_spec,
            pl.BlockSpec((Cout, 2), lambda n: (0, 0)),
        ],
        out_specs=pl.BlockSpec((B, Cout, rows), lambda n: (n, 0, 0)),
        scratch_shapes=scratch,
        compiler_params=pltpu.CompilerParams(
            dimension_semantics=("parallel",),
            vmem_limit_bytes=64 * 1024 * 1024),
        cost_estimate=cost,
    )(x_flat, w_arg, sb)

    y = out_flat.reshape(N, Cout, T1, V)
    if stride > 1:
        # TODO(synk): push the stride into the kernel (block-strided tap gather)
        # instead of computing the stride-1 output and subsampling it here.
        T_out = (T + 2 * pad - kernel_size) // stride + 1
        y = y[:, :, ::stride, :][:, :, :T_out, :]

    # DropBlock_Ske / DropBlockT_1d are identity when keep_prob == 1 (or eval).
    # TODO(synk): stochastic DropBlock paths (keep_prob < 1 in training) not implemented.
    del A, keep_prob
    return y


def _reference_forward(x_nchw, params, *, kernel_size=9, stride=1):
    """Plain-JAX f32 reference (lax conv + eval BN) used only for correctness."""
    pad = (kernel_size - 1) // 2
    eps = 1e-5
    w = params["conv_w"]
    out = jax.lax.conv_general_dilated(
        x_nchw, w, window_strides=(stride, 1),
        padding=((pad, pad), (0, 0)),
        dimension_numbers=("NCHW", "OIHW", "NCHW"))
    out = out + params["conv_b"][None, :, None, None]
    out = (out - params["bn_mean"][None, :, None, None]) / jnp.sqrt(
        params["bn_var"] + eps)[None, :, None, None]
    out = out * params["bn_gamma"][None, :, None, None] + \
        params["bn_beta"][None, :, None, None]
    return out


if __name__ == "__main__":
    cases = [
        # (name,            N, Cin, Cout,  T,  V, K, stride)
        ("small_stride1",   2,   4,    8, 16, 16, 9, 1),   # stacked-contraction path
        ("small_stride2",   2,   4,    8, 16, 16, 9, 2),   # exercises stride > 1
        ("wide_channels",   2,  64,  128, 16, 16, 9, 1),   # per-tap full-depth path
    ]
    root = jax.random.PRNGKey(0)
    for idx, (name, N, Cin, Cout, T, V, K, stride) in enumerate(cases):
        key = jax.random.fold_in(root, idx)
        k_x, k_w, k_bn, k_a = jax.random.split(key, 4)
        x = jax.random.normal(k_x, (N, Cin, T, V), jnp.float32)   # NCHW = (N, C, T, V)
        A = jax.random.uniform(k_a, (V, V), jnp.float32)          # adjacency (keep_prob=1)

        params = init_unit_tcn_params(k_w, Cin, Cout, K)
        kb1, kb2, kb3, kb4, kb5 = jax.random.split(k_bn, 5)
        # Perturb BN stats / conv bias so the fused affine is non-trivially tested.
        params["conv_b"] = 0.1 * jax.random.normal(kb1, (Cout,), jnp.float32)
        params["bn_gamma"] = 1.0 + 0.1 * jax.random.normal(kb2, (Cout,), jnp.float32)
        params["bn_beta"] = 0.1 * jax.random.normal(kb3, (Cout,), jnp.float32)
        params["bn_mean"] = 0.1 * jax.random.normal(kb4, (Cout,), jnp.float32)
        params["bn_var"] = jnp.abs(1.0 + 0.1 * jax.random.normal(kb5, (Cout,), jnp.float32))

        y = unit_tcn_forward(x, params, keep_prob=1.0, A=A,
                             kernel_size=K, stride=stride)
        y = jax.block_until_ready(y)

        y_ref = _reference_forward(x, params, kernel_size=K, stride=stride)
        assert y.shape == y_ref.shape, (name, y.shape, y_ref.shape)
        # bf16 activations/weights vs f32 reference -> loose but meaningful tolerance.
        max_err = float(jnp.max(jnp.abs(y - y_ref)))
        ref_scale = float(jnp.max(jnp.abs(y_ref))) + 1e-6
        assert max_err / ref_scale < 3e-2, (name, max_err, ref_scale)

    print("KERNEL_OK")
</pallas_src>

<mosaic_0001>
module attributes {stable_mosaic.version = 11 : i64} {
  func.func @_unit_tcn_kernel_stacked(%arg0: i32, %arg1: memref<1x4x384xbf16, #tpu.memory_space<vmem>>, %arg2: memref<8x36xbf16, #tpu.memory_space<vmem>>, %arg3: memref<8x2xf32, #tpu.memory_space<vmem>>, %arg4: memref<1x8x256xf32, #tpu.memory_space<vmem>>, %arg5: memref<36x256xf32, #tpu.memory_space<vmem>>) attributes {dimension_semantics = [#tpu.dimension_semantics<parallel>], iteration_bounds = array<i64: 2>, scalar_prefetch = 0 : i64, scratch_operands = 1 : i64, tpu.core_type = #tpu.core_type<tc>, window_params = [{transform_indices = @transform_0, window_bounds = array<i64: 1, 4, 384>}, {pipeline_mode = #tpu.pipeline_mode<synchronous>, transform_indices = @transform_1, window_bounds = array<i64: 8, 36>}, {pipeline_mode = #tpu.pipeline_mode<synchronous>, transform_indices = @transform_2, window_bounds = array<i64: 8, 2>}, {transform_indices = @transform_3, window_bounds = array<i64: 1, 8, 256>}]} {
    %c0 = arith.constant 0 : index
    %c0_0 = arith.constant 0 : index
    %0 = vector.load %arg3[%c0, %c0_0] : memref<8x2xf32, #tpu.memory_space<vmem>>, vector<8x1xf32>
    %c0_1 = arith.constant 0 : index
    %c1 = arith.constant 1 : index
    %1 = vector.load %arg3[%c0_1, %c1] : memref<8x2xf32, #tpu.memory_space<vmem>>, vector<8x1xf32>
    %c0_2 = arith.constant 0 : index
    %c0_3 = arith.constant 0 : index
    %c0_4 = arith.constant 0 : index
    %2 = vector.load %arg1[%c0_2, %c0_3, %c0_4] : memref<1x4x384xbf16, #tpu.memory_space<vmem>>, vector<1x4x384xbf16>
    %3 = vector.shape_cast %2 : vector<1x4x384xbf16> to vector<4x384xbf16>
    %4 = vector.extract_strided_slice %3 {offsets = [0, 0], sizes = [4, 256], strides = [1, 1]} : vector<4x384xbf16> to vector<4x256xbf16>
    %5 = arith.extf %4 : vector<4x256xbf16> to vector<4x256xf32>
    %c0_5 = arith.constant 0 : index
    %c0_6 = arith.constant 0 : index
    %6 = vector.load %arg5[%c0_5, %c0_6] : memref<36x256xf32, #tpu.memory_space<vmem>>, vector<4x256xf32>
    tpu.vector_store %arg5[%c0_5, %c0_6], %5 {strides = array<i32>} : memref<36x256xf32, #tpu.memory_space<vmem>>, vector<4x256xf32>,
    %7 = vector.extract_strided_slice %3 {offsets = [0, 16], sizes = [4, 256], strides = [1, 1]} : vector<4x384xbf16> to vector<4x256xbf16>
    %8 = arith.extf %7 : vector<4x256xbf16> to vector<4x256xf32>
    %c4 = arith.constant 4 : index
    %c0_7 = arith.constant 0 : index
    %9 = vector.load %arg5[%c4, %c0_7] : memref<36x256xf32, #tpu.memory_space<vmem>>, vector<4x256xf32>
    tpu.vector_store %arg5[%c4, %c0_7], %8 {strides = array<i32>} : memref<36x256xf32, #tpu.memory_space<vmem>>, vector<4x256xf32>,
    %10 = vector.extract_strided_slice %3 {offsets = [0, 32], sizes = [4, 256], strides = [1, 1]} : vector<4x384xbf16> to vector<4x256xbf16>
    %11 = arith.extf %10 : vector<4x256xbf16> to vector<4x256xf32>
    %c8 = arith.constant 8 : index
    %c0_8 = arith.constant 0 : index
    %12 = vector.load %arg5[%c8, %c0_8] : memref<36x256xf32, #tpu.memory_space<vmem>>, vector<4x256xf32>
    tpu.vector_store %arg5[%c8, %c0_8], %11 {strides = array<i32>} : memref<36x256xf32, #tpu.memory_space<vmem>>, vector<4x256xf32>,
    %13 = vector.extract_strided_slice %3 {offsets = [0, 48], sizes = [4, 256], strides = [1, 1]} : vector<4x384xbf16> to vector<4x256xbf16>
    %14 = arith.extf %13 : vector<4x256xbf16> to vector<4x256xf32>
    %c12 = arith.constant 12 : index
    %c0_9 = arith.constant 0 : index
    %15 = vector.load %arg5[%c12, %c0_9] : memref<36x256xf32, #tpu.memory_space<vmem>>, vector<4x256xf32>
    tpu.vector_store %arg5[%c12, %c0_9], %14 {strides = array<i32>} : memref<36x256xf32, #tpu.memory_space<vmem>>, vector<4x256xf32>,
    %16 = vector.extract_strided_slice %3 {offsets = [0, 64], sizes = [4, 256], strides = [1, 1]} : vector<4x384xbf16> to vector<4x256xbf16>
    %17 = arith.extf %16 : vector<4x256xbf16> to vector<4x256xf32>
    %c16 = arith.constant 16 : index
    %c0_10 = arith.constant 0 : index
    %18 = vector.load %arg5[%c16, %c0_10] : memref<36x256xf32, #tpu.memory_space<vmem>>, vector<4x256xf32>
    tpu.vector_store %arg5[%c16, %c0_10], %17 {strides = array<i32>} : memref<36x256xf32, #tpu.memory_space<vmem>>, vector<4x256xf32>,
    %19 = vector.extract_strided_slice %3 {offsets = [0, 80], sizes = [4, 256], strides = [1, 1]} : vector<4x384xbf16> to vector<4x256xbf16>
    %20 = arith.extf %19 : vector<4x256xbf16> to vector<4x256xf32>
    %c20 = arith.constant 20 : index
    %c0_11 = arith.constant 0 : index
    %21 = vector.load %arg5[%c20, %c0_11] : memref<36x256xf32, #tpu.memory_space<vmem>>, vector<4x256xf32>
    tpu.vector_store %arg5[%c20, %c0_11], %20 {strides = array<i32>} : memref<36x256xf32, #tpu.memory_space<vmem>>, vector<4x256xf32>,
    %22 = vector.extract_strided_slice %3 {offsets = [0, 96], sizes = [4, 256], strides = [1, 1]} : vector<4x384xbf16> to vector<4x256xbf16>
    %23 = arith.extf %22 : vector<4x256xbf16> to vector<4x256xf32>
    %c24 = arith.constant 24 : index
    %c0_12 = arith.constant 0 : index
    %24 = vector.load %arg5[%c24, %c0_12] : memref<36x256xf32, #tpu.memory_space<vmem>>, vector<4x256xf32>
    tpu.vector_store %arg5[%c24, %c0_12], %23 {strides = array<i32>} : memref<36x256xf32, #tpu.memory_space<vmem>>, vector<4x256xf32>,
    %25 = vector.extract_strided_slice %3 {offsets = [0, 112], sizes = [4, 256], strides = [1, 1]} : vector<4x384xbf16> to vector<4x256xbf16>
    %26 = arith.extf %25 : vector<4x256xbf16> to vector<4x256xf32>
    %c28 = arith.constant 28 : index
    %c0_13 = arith.constant 0 : index
    %27 = vector.load %arg5[%c28, %c0_13] : memref<36x256xf32, #tpu.memory_space<vmem>>, vector<4x256xf32>
    tpu.vector_store %arg5[%c28, %c0_13], %26 {strides = array<i32>} : memref<36x256xf32, #tpu.memory_space<vmem>>, vector<4x256xf32>,
    %28 = vector.extract_strided_slice %3 {offsets = [0, 128], sizes = [4, 256], strides = [1, 1]} : vector<4x384xbf16> to vector<4x256xbf16>
    %29 = arith.extf %28 : vector<4x256xbf16> to vector<4x256xf32>
    %c32 = arith.constant 32 : index
    %c0_14 = arith.constant 0 : index
    %30 = vector.load %arg5[%c32, %c0_14] : memref<36x256xf32, #tpu.memory_space<vmem>>, vector<4x256xf32>
    tpu.vector_store %arg5[%c32, %c0_14], %29 {strides = array<i32>} : memref<36x256xf32, #tpu.memory_space<vmem>>, vector<4x256xf32>,
    %c0_15 = arith.constant 0 : index
    %c0_16 = arith.constant 0 : index
    %31 = vector.load %arg2[%c0_15, %c0_16] : memref<8x36xbf16, #tpu.memory_space<vmem>>, vector<8x36xbf16>
    %c0_17 = arith.constant 0 : index
    %c0_18 = arith.constant 0 : index
    %32 = vector.load %arg5[%c0_17, %c0_18] : memref<36x256xf32, #tpu.memory_space<vmem>>, vector<36x256xf32>
    %33 = arith.truncf %32 : vector<36x256xf32> to vector<36x256xbf16>
    %cst = arith.constant dense<0.000000e+00> : vector<8x256xf32>
    %34 = tpu.matmul %31, %33, %cst {dimension_numbers = #tpu.dot_dimension_numbers<[1], [0], [0], [1], [0, 0, 1, 1], [], []>} : vector<8x36xbf16>, vector<36x256xbf16>, vector<8x256xf32> -> vector<8x256xf32>
    %35 = vector.broadcast %0 : vector<8x1xf32> to vector<8x256xf32>
    %36 = arith.mulf %34, %35 : vector<8x256xf32>
    %37 = vector.broadcast %1 : vector<8x1xf32> to vector<8x256xf32>
    %38 = arith.addf %36, %37 : vector<8x256xf32>
    %c0_19 = arith.constant 0 : index
    %c0_20 = arith.constant 0 : index
    %c0_21 = arith.constant 0 : index
    %39 = vector.load %arg4[%c0_19, %c0_20, %c0_21] : memref<1x8x256xf32, #tpu.memory_space<vmem>>, vector<1x8x256xf32>
    %40 = vector.shape_cast %39 : vector<1x8x256xf32> to vector<8x256xf32>
    %41 = vector.shape_cast %38 : vector<8x256xf32> to vector<1x8x256xf32>
    tpu.vector_store %arg4[%c0_19, %c0_20, %c0_21], %41 {strides = array<i32>} : memref<1x8x256xf32, #tpu.memory_space<vmem>>, vector<1x8x256xf32>,
    return
  }
  func.func @transform_0(%arg0: i32) -> (i32, i32, i32) {
    %c0_i32 = arith.constant 0 : i32
    %c0_i32_0 = arith.constant 0 : i32
    %c0_i32_1 = arith.constant 0 : i32
    return %arg0, %c0_i32, %c0_i32_0 : i32, i32, i32
  }
  func.func @transform_1(%arg0: i32) -> (i32, i32) {
    %c0_i32 = arith.constant 0 : i32
    %c0_i32_0 = arith.constant 0 : i32
    %c0_i32_1 = arith.constant 0 : i32
    return %c0_i32, %c0_i32_0 : i32, i32
  }
  func.func @transform_2(%arg0: i32) -> (i32, i32) {
    %c0_i32 = arith.constant 0 : i32
    %c0_i32_0 = arith.constant 0 : i32
    %c0_i32_1 = arith.constant 0 : i32
    return %c0_i32, %c0_i32_0 : i32, i32
  }
  func.func @transform_3(%arg0: i32) -> (i32, i32, i32) {
    %c0_i32 = arith.constant 0 : i32
    %c0_i32_0 = arith.constant 0 : i32
    %c0_i32_1 = arith.constant 0 : i32
    return %arg0, %c0_i32, %c0_i32_0 : i32, i32, i32
  }
}

</mosaic_0001>

<bundles_post_ra>
// kernel: tpu_custom_call.1
= control target key start
LH: loop header
LB: loop body
LE: loop exit
PB: predicated region body
PF: predicated region fallthrough
CT: control target
= control target key end

     0   :  { %8 = vsyncpa [#allocation4], 0  ;;  %s1075_s0 = inlined_call_operand.hbm [shape: bf16[2,4,384], index: 0, kind: input, shape index: {}]   ;;  %s1076_s1 = inlined_call_operand.hbm [shape: bf16[8,36], index: 1, kind: input, shape index: {}]   ;;  %s1077_s2 = inlined_call_operand.hbm [shape: f32[8,2], index: 2, kind: input, shape index: {}]   ;;  %s1078_s3 = inlined_call_operand.hbm [shape: f32[2,8,256], index: 3, kind: output, shape index: {}]  }
   0x1   :  { %10 = vsyncpa [#allocation4 + $0x1], 0 }
   0x2   :  { %11 = vsyncpa [#allocation7], 0 }
   0x3   :  { %12 = vsyncpa [#allocation5], 0 }
   0x4   :  { %14 = vsyncpa [#allocation5 + $0x1], 0  ;;  %s839_s12 = smov 0   ;;  %s841_s13 = smov 0  }
   0x5   :  { %s843_s14 = smov 0   ;;  %s845_s15 = smov 0  }
   0x6 LB: > { %s860_s16 = sadd.s32 4294967295, %s804_s15   ;;  %s513_s17 = sadd.s32 4294967294, %s804_s15   ;;  %s804_s15 = sphi %s845_s15, %s1098_s15   ;;  %s800_s14 = sphi %s843_s14, %s1097_s14   ;;  %s796_s13 = sphi %s841_s13, %s1096_s13   ;;  %s792_s12 = sphi %s839_s12, %s1095_s12  }
   0x7   : > { %p40_p0 = scmp.ne.s32.totalorder %s796_s13, %s792_s12  ;;  %p1079_p1 = scmp.eq.s32.totalorder %s860_s16, 0 }
   0x8   : > { %p112_p3 = scmp.eq.s32.totalorder %s513_s17, 1  ;;  %p514_p5 = scmp.ge.s32.totalorder %s804_s15, 1 }
   0x9   : > { %p869_p4 = por %p1079_p1, %p40_p0  ;;  %p119_p7 = scmp.lt.s32.totalorder %s804_s15, 3 }
   0xa   : > { %p874_p6 = por %p112_p3, %p40_p0  ;;  %s806_s21 = smov [#allocation6]  }
   0xb   : > { %s1082_s18 = scalar_select %p869_p4, 1, 0 }
   0xc   : > { %s1083_s19 = scalar_select %p874_p6, 1, 0 }
   0xd   : > { %p879_p8 = pnand %p514_p5, %p119_p7  ;;  %s132_s22 = sshll.u32 %s806_s21, 4  ;;  %s133_s22 = int_to_ptr.vmem [resolvable:$true] %s132_s22 }
   0xe   : > { %s807_s23 = smov [#allocation8]   ;;  %s895_s26 = sadd.s32 1, %s804_s15  }
   0xf   : > { %s1084_s20 = scalar_select %p879_p8, 1, 0 }
  0x10   : > { %p546_p10 = pneg %p879_p8  ;;  %s143_s24 = sshll.u32 %s807_s23, 4  ;;  %s892_s24 = int_to_ptr.vmem [resolvable:$true] %s143_s24 }
  0x11   : > { %s24_s27 = ssub.s32 %s804_s15, %s895_s26  ;;  %s648_s30 = scalar_lea.hbm %s1076_s1, 64 }
  0x12   : > { %p888_p11 = pnand %p546_p10, %p1079_p1  ;;  %p649_p12 = scmp.ne.s32.totalorder %s1076_s1, %s648_s30 }
  0x13   : > { %p655_p5 = scmp.lt.u32.totalorder %s648_s30, %s1076_s1 }
  0x14   : > { %p650_p13 = pneg %p888_p11 }
  0x16   : > { %p651_p0 = pnand %p650_p13, %p649_p12 }
  0x18   : > { %p652_p3 = pneg %p651_p0 }
  0x1a   : > { %p657_p7 = pnand %p655_p5, %p652_p3 }
  0x1c   : > { %660 = shalt.err (!%p657_p7)
}
  0x1d   : > { %s661_s8 = scalar_lea.vmem %s133_s22, 64  ;;  %p669_p2 = scmp.lt.s32.totalorder %s133_s22, %s133_s22 }
  0x1e   : > { %p662_p10 = scmp.ne.s32.totalorder %s133_s22, %s661_s8  ;;  %p670_p6 = scmp.lt.s32.totalorder %s661_s8, %s661_s8 }
  0x20   : > { %p664_p9 = pnand %p662_p10, %p650_p13  ;;  %p671_p4 = por %p670_p6, %p669_p2 }
  0x22   : > { %p665_p1 = pneg %p664_p9 }
  0x24   : > { %p672_p8 = pnand %p671_p4, %p665_p1 }
  0x26   : > { %675 = shalt.err (!%p672_p8)
}
  0x27   : > { %549 = dma.hbm_to_vmem [thread:$0]  (!%p888_p11), %s1076_s1, 64, %s133_s22, [#allocation7]  }
  0x28   : > { %s676_s21 = scalar_lea.hbm %s1077_s2, 128 }
  0x29   : > { %p677_p9 = scmp.ne.s32.totalorder %s1077_s2, %s676_s21  ;;  %p683_p4 = scmp.lt.u32.totalorder %s676_s21, %s1077_s2 }
  0x2b   : > { %p679_p2 = pnand %p677_p9, %p650_p13 }
  0x2d   : > { %p680_p1 = pneg %p679_p2 }
  0x2f   : > { %p685_p6 = pnand %p683_p4, %p680_p1 }
  0x31   : > { %688 = shalt.err (!%p685_p6)
}
  0x32   : > { %s689_s22 = scalar_lea.vmem %s892_s24, 128  ;;  %p697_p3 = scmp.lt.s32.totalorder %s892_s24, %s892_s24 }
  0x33   : > { %p690_p8 = scmp.ne.s32.totalorder %s892_s24, %s689_s22  ;;  %p698_p5 = scmp.lt.s32.totalorder %s689_s22, %s689_s22 }
  0x35   : > { %p692_p12 = pnand %p690_p8, %p650_p13  ;;  %p699_p7 = por %p698_p5, %p697_p3 }
  0x37   : > { %p693_p0 = pneg %p692_p12 }
  0x39   : > { %p700_p10 = pnand %p699_p7, %p693_p0 }
  0x3b   : > { %703 = shalt.err (!%p700_p10)
}
  0x3c   : > { %552 = dma.hbm_to_vmem [thread:$0]  (!%p888_p11), %s1077_s2, 128, %s892_s24, [#allocation7]  }
  0x3d   : > { %p25_p13 = scmp.eq.s32.totalorder %s24_s27, 0  ;;  %s27_s6 = sadd.s32 1, %s800_s14 }
  0x3e   : > { %p34_p9 = scmp.ne.s32.totalorder %s800_s14, %s796_s13  ;;  %p35_p2 = scmp.eq.s32.totalorder %s804_s15, 0 }
  0x3f   : > { %s954_s25 = scalar_select %p25_p13, %s800_s14, %s27_s6  }
  0x40   : > { %p36_p1 = por %p35_p2, %p34_p9  ;;  %p1086_p4 = scmp.eq.s32.totalorder %s860_s16, 1 }
  0x41   : > { %p563_p8 = scmp.lt.s32.totalorder %s804_s15, 2  ;;  %s154_s8 = sand.u32 1, %s800_s14  }
  0x42   : > { %p958_p6 = por %p1086_p4, %p34_p9  ;;  %s531_s9 = smul.u32 6, %s154_s8 }
  0x43   : > { %s532_s10 = smul.u32 96, %s804_s15  ;;  %p965_p12 = pnand %p563_p8, %p36_p1 }
  0x44   : > { %s158_s21 = scalar_lea.vmem [#allocation3], %s531_s9  ;;  %s155_s28 = scalar_lea.sflag [#allocation4], %s154_s8 }
  0x45   : > { %s972_s17 = scalar_lea.hbm %s1075_s0, %s532_s10  ;;  %s166_s23 = sshll.u32 %s158_s21, 4  ;;  %s974_s23 = int_to_ptr.vmem [resolvable:$true] %s166_s23 }
  0x46   : > { %s704_s29 = scalar_lea.hbm %s972_s17, 96  ;;  %p706_p0 = pneg %p965_p12 }
  0x47   : > { %p705_p11 = scmp.ne.s32.totalorder %s972_s17, %s704_s29  ;;  %s709_s4 = scalar_lea.hbm %s1075_s0, 192 }
  0x48   : > { %p710_p7 = scmp.lt.u32.totalorder %s972_s17, %s1075_s0  ;;  %p711_p10 = scmp.lt.u32.totalorder %s709_s4, %s704_s29 }
  0x49   : > { %p707_p3 = pnand %p706_p0, %p705_p11  ;;  %p713_p9 = scmp.lt.u32.totalorder %s704_s29, %s972_s17 }
  0x4a   : > { %p712_p13 = por %p711_p10, %p710_p7 }
  0x4b   : > { %p708_p5 = pneg %p707_p3 }
  0x4c   : > { %p714_p2 = por %p713_p9, %p712_p13 }
  0x4e   : > { %p715_p1 = pnand %p714_p2, %p708_p5 }
  0x50   : > { %718 = shalt.err (!%p715_p1)
}
  0x51   : > { %s719_s8 = scalar_lea.vmem %s974_s23, 96  ;;  %s808_s9 = smov [#allocation3]  }
  0x52   : > { %p720_p4 = scmp.ne.s32.totalorder %s974_s23, %s719_s8  ;;  %s724_s10 = sshll.u32 %s808_s9, 4  ;;  %s725_s10 = int_to_ptr.vmem [resolvable:$false] %s724_s10 }
  0x53   : > { %s726_s24 = scalar_lea.vmem %s725_s10, 192  ;;  %p727_p3 = scmp.lt.s32.totalorder %s974_s23, %s725_s10 }
  0x54   : > { %p722_p8 = pnand %p720_p4, %p706_p0  ;;  %p728_p7 = scmp.lt.s32.totalorder %s726_s24, %s719_s8 }
  0x56   : > { %p723_p11 = pneg %p722_p8  ;;  %p729_p10 = por %p728_p7, %p727_p3 }
  0x58   : > { %p730_p13 = pnand %p729_p10, %p723_p11 }
  0x5a   : > { %733 = shalt.err (!%p730_p13)
}
  0x5b   : > { %556 = dma.hbm_to_vmem [thread:$0]  (!%p965_p12), %s972_s17, 96, %s974_s23, %s155_s28  }
  0x5c   : > { %p1089_p5 = scmp.ne.s32.totalorder %s1084_s20, 0 }
  0x5d   : > { %s1004_s27 = sand.u32 (!%p1089_p5), 1, %s796_s13   ;;  %p1090_p0 = scmp.ne.s32.totalorder (!%p1089_p5), %s1082_s18, 0 }
  0x5e   : > { %175 = sbr.rel (%p1089_p5) target bundleno = 500 (0x1f4), region = 32  ;;  %s178_s29 = scalar_lea.sflag (!%p1089_p5), [#allocation4], %s1004_s27 }
  0x5f   : > { %s533_s21 = smul.u32 (!%p1089_p5), 6, %s1004_s27 }
  0x61   : > { %s181_s30 = scalar_lea.vmem (!%p1089_p5), [#allocation3], %s533_s21 }
  0x65   : > { %779 = dma.done.wait (%p1090_p0), %s178_s29, 96  }
  0x66   : > { %781 = vsyncadd (%p1090_p0), %s178_s29, 4294967200  ;;  %p1091_p9 = scmp.eq.s32.totalorder %s860_s16, 0 }
  0x68   : > { %783 = dma.done.wait (%p1091_p9), [#allocation7], 192   ;;  %p1092_p12 = pmov %p1091_p9 }
  0x69   : > { %v214_v0 = vld [vmem:[%s181_s30] sm:$0x3f]  ;;  %s809_s20 = smov 96   ;;  %s810_s11 = smov 80   ;;  %v816_v11 = vmov 0   ;;  %v213_v12 = vld [vmem:[#allocation8] sm:$0xff] }
  0x6a   : > { %785 = vsyncadd (%p1092_p12), [#allocation7], 4294967104  ;;  %v215_v1 = vunpack.c.l.bf16 %v214_v0  ;;  %v221_v2 = vunpack.c.h.bf16 %v214_v0  ;;  %s811_s18 = smov 112   ;;  %s812_s17 = smov 64   ;;  %v317_v8 = vrot.slane %v214_v0, 2  ;;  %385 = vmatprep.mubr.bf16.mxu0 %v816_v11  ;;  %645 = vset.pattern.permute.xlu0 %v816_v11  ;;  %v817_v13 = vmov 1  }
  0x6b   : > { %s813_s23 = smov 48   ;;  %s814_s28 = smov 32   ;;  %646 = vset.pattern.permute.xlu1 %v817_v13  ;;  %vm257_vm0 = vcmask 654336   ;;  %vm231_vm1 = vcmask 916480   ;;  %vm244_vm2 = vcmask 785408   ;;  %vm270_vm3 = vcmask 523264  }
  0x6c   : > { %238 = vrot.lane.b32.xlu0 %v215_v1, %s809_s20  ;;  %219 = vst [vmem:[#allocation2] sm:$0xf] %v215_v1  ;;  %v224_v3 = vcombine.low %v221_v2, %v221_v2  ;;  %v217_v4 = vcombine.high %v215_v1, %v215_v1  ;;  %v223_v6 = vcombine.low %v215_v1, %v215_v1  ;;  %v319_v9 = vunpack.c.l.bf16 %v317_v8  ;;  %s815_s22 = smov 16   ;;  %s522_s4 = sshll.u32 %s1004_s27, 4 }
  0x6d   : > { %vm283_vm4 = vcmask 392192   ;;  %vm296_vm5 = vcmask 261120   ;;  %vm309_vm6 = vcmask 130048   ;;  %vm346_vm7 = vcmask 1041408   ;;  %s530_s5 = sshll.u32 %s860_s16, 8  ;;  %s211_s6 = scalar_lea.vmem [#allocation9], %s522_s4 }
  0x6e   : > { %v620_v5 = vpack.i.bf16 %v224_v3, %v215_v1  ;;  %220 = vst [vmem:[#allocation2 + $0x8] sm:$0xf] %v217_v4  ;;  %v615_v7 = vpack.i.bf16 %v221_v2, %v217_v4  ;;  %v321_v10 = vcombine.high %v319_v9, %v319_v9  ;;  %323 = vst [vmem:[#allocation2 + $0x40] sm:$0xf] %v319_v9  ;;  %v325_v9 = vld [vmem:[#allocation6] sm:$0xf]  ;;  %s1031_s24 = scalar_lea.hbm %s1078_s3, %s530_s5 }
  0x6f   : > { %vm342_vm8 = vcmask 293888   ;;  %s424_s8 = sshll.u32 %s211_s6, 4  ;;  %s410_s16 = scalar_lea.sflag [#allocation5], %s1004_s27  ;;  %s1033_s8 = int_to_ptr.vmem [resolvable:$true] %s424_s8 }
  0x70   : > { %621 = vrot.lane.b32.xlu1 %v620_v5, %s810_s11  ;;  %611 = vrot.lane.b32.xlu0 %v620_v5, %s811_s18  ;;  %324 = vst [vmem:[#allocation2 + $0x48] sm:$0xf] %v321_v10  ;;  %s734_s21 = scalar_lea.vmem %s1033_s8, 256  ;;  %s818_s29 = smov [#allocation9]  }
  0x71   : > { %p735_p2 = scmp.ne.s32.totalorder %s1033_s8, %s734_s21  ;;  %s738_s30 = sshll.u32 %s818_s29, 4  ;;  %s739_s30 = int_to_ptr.vmem [resolvable:$false] %s738_s30 }
  0x72   : > { %p741_p8 = scmp.lt.s32.totalorder %s1033_s8, %s739_s30 }
  0x73   : > { %p736_p1 = pnand %p735_p2, %p958_p6 }
  0x74   : > { %225 = vrot.lane.b32.xlu1 %v223_v6, %s811_s18  ;;  %616 = vrot.lane.b32.xlu0 %v615_v7, %s809_s20  ;;  %s740_s20 = scalar_lea.vmem %s739_s30, 512 }
  0x75   : > { %v334_v2 = vld [vmem:[#allocation2 + $0x40] sm:$0xf]  ;;  %p737_p4 = pneg %p736_p1  ;;  %p742_p11 = scmp.lt.s32.totalorder %s740_s20, %s734_s21 }
  0x77   : > { %p743_p3 = por %p742_p11, %p741_p8 }
  0x78   : > { %251 = vrot.lane.b32.xlu1 %v223_v6, %s810_s11  ;;  %626 = vrot.lane.b32.xlu0 %v615_v7, %s812_s17 }
  0x79   : > { %p744_p7 = pnand %p743_p3, %p737_p4 }
  0x7c   : > { %631 = vrot.lane.b32.xlu1 %v620_v5, %s813_s23  ;;  %636 = vrot.lane.b32.xlu0 %v615_v7, %s814_s28 }
  0x80   : > { %641 = vrot.lane.b32.xlu1 %v620_v5, %s815_s22  ;;  %264 = vrot.lane.b32.xlu0 %v215_v1, %s812_s17 }
  0x84   : > { %277 = vrot.lane.b32.xlu1 %v223_v6, %s813_s23  ;;  %290 = vrot.lane.b32.xlu0 %v215_v1, %s814_s28  ;;  %v335_v1 = vld [vmem:[#allocation2 + $0x48] sm:$0xf] }
  0x85   : > { %v341_v5 = vpack.c.bf16 %v335_v1, %v335_v1 }
  0x88   : > { %303 = vrot.lane.b32.xlu1 %v223_v6, %s815_s22  ;;  %396 = vperm.xlu0 %645, %v213_v12   ;;  %v340_v6 = vpack.c.bf16 %v334_v2, %v334_v2 }
  0x8a   : > { %v348_v8 = vsel %vm346_vm7, %v340_v6, 0 }
  0x8c   : > { %402 = vperm.xlu1 %646, %v213_v12   ;;  %647 = vset.pattern.permute.xlu0 %v817_v13 }
  0xde   : > { %v239_v14 = vpop.permute.xlu0 %238 }
  0xe2   : > { %v622_v15 = vpop.permute.xlu1 %621  ;;  %v612_v16 = vpop.permute.xlu0 %611 }
  0xe3   : > { %v624_v17 = vunpack.i.h.bf16 %v622_v15  ;;  %v623_v18 = vunpack.i.l.bf16 %v622_v15  ;;  %v614_v19 = vunpack.i.h.bf16 %v612_v16  ;;  %v613_v20 = vunpack.i.l.bf16 %v612_v16 }
  0xe5   : > { %v233_v21 = vsel %vm231_vm1, %v613_v20, %v614_v19  ;;  %v259_v22 = vsel %vm257_vm0, %v623_v18, %v624_v17 }
  0xe6   : > { %237 = vst [vmem:[#allocation2 + $0x8] sm:$0xf0] %v233_v21  ;;  %v226_v23 = vpop.permute.xlu1 %225  ;;  %v617_v24 = vpop.permute.xlu0 %616  ;;  %263 = vst [vmem:[#allocation2 + $0x18] sm:$0xf0] %v259_v22 }
  0xe7   : > { %v232_v25 = vsel %vm231_vm1, %v226_v23, %v613_v20  ;;  %v619_v26 = vunpack.i.h.bf16 %v617_v24  ;;  %v618_v27 = vunpack.i.l.bf16 %v617_v24 }
  0xe8   : > { %236 = vst [vmem:[#allocation2] sm:$0xf0] %v232_v25 }
  0xe9   : > { %v245_v28 = vsel %vm244_vm2, %v239_v14, %v618_v27  ;;  %v246_v29 = vsel %vm244_vm2, %v618_v27, %v619_v26 }
  0xea   : > { %249 = vst [vmem:[#allocation2 + $0x10] sm:$0xf] %v245_v28  ;;  %250 = vst [vmem:[#allocation2 + $0x18] sm:$0xf] %v246_v29  ;;  %v252_v30 = vpop.permute.xlu1 %251  ;;  %v627_v31 = vpop.permute.xlu0 %626 }
  0xeb   : > { %v258_v32 = vsel %vm257_vm0, %v252_v30, %v623_v18  ;;  %v629_v33 = vunpack.i.h.bf16 %v627_v31  ;;  %v628_v34 = vunpack.i.l.bf16 %v627_v31 }
  0xec   : > { %262 = vst [vmem:[#allocation2 + $0x10] sm:$0xf0] %v258_v32 }
  0xed   : > { %v272_v35 = vsel %vm270_vm3, %v628_v34, %v629_v33  ;;  %v327_v42 = vld [vmem:[#allocation2 + $0x8] sm:$0xff] }
  0xee   : > { %v632_v36 = vpop.permute.xlu1 %631  ;;  %v637_v37 = vpop.permute.xlu0 %636  ;;  %276 = vst [vmem:[#allocation2 + $0x28] sm:$0xf] %v272_v35 }
  0xef   : > { %v634_v38 = vunpack.i.h.bf16 %v632_v36  ;;  %v633_v39 = vunpack.i.l.bf16 %v632_v36  ;;  %v639_v40 = vunpack.i.h.bf16 %v637_v37  ;;  %v638_v41 = vunpack.i.l.bf16 %v637_v37  ;;  %v326_v52 = vld [vmem:[#allocation2] sm:$0xff] }
  0xf1   : > { %v329_v43 = vld [vmem:[#allocation2 + $0x18] sm:$0xff]  ;;  %v285_v44 = vsel %vm283_vm4, %v633_v39, %v634_v38  ;;  %v298_v45 = vsel %vm296_vm5, %v638_v41, %v639_v40 }
  0xf2   : > { %v642_v46 = vpop.permute.xlu1 %641  ;;  %v265_v47 = vpop.permute.xlu0 %264  ;;  %v337_v48 = vpack.c.bf16 %v329_v43, %v327_v42  ;;  %289 = vst [vmem:[#allocation2 + $0x28] sm:$0xf0] %v285_v44  ;;  %302 = vst [vmem:[#allocation2 + $0x38] sm:$0xf] %v298_v45 }
  0xf3   : > { %v644_v49 = vunpack.i.h.bf16 %v642_v46  ;;  %v643_v50 = vunpack.i.l.bf16 %v642_v46  ;;  %v271_v51 = vsel %vm270_vm3, %v265_v47, %v628_v34  ;;  %v328_v53 = vld [vmem:[#allocation2 + $0x10] sm:$0xff] }
  0xf4   : > { %275 = vst [vmem:[#allocation2 + $0x20] sm:$0xf] %v271_v51  ;;  %353 = vmatprep.subr.bf16.mxu0 %v337_v48  ;;  %v336_v54 = vpack.c.bf16 %v328_v53, %v326_v52 }
  0xf5   : > { %v311_v55 = vsel %vm309_vm6, %v643_v50, %v644_v49 }
  0xf6   : > { %v278_v56 = vpop.permute.xlu1 %277  ;;  %v291_v57 = vpop.permute.xlu0 %290  ;;  %354 = vmatpush1.bf16.msra.mxu0 %v336_v54  ;;  %315 = vst [vmem:[#allocation2 + $0x38] sm:$0xf0] %v311_v55 }
  0xf7   : > { %v284_v58 = vsel %vm283_vm4, %v278_v56, %v633_v39  ;;  %v297_v59 = vsel %vm296_vm5, %v291_v57, %v638_v41 }
  0xf8   : > { %288 = vst [vmem:[#allocation2 + $0x20] sm:$0xf0] %v284_v58  ;;  %301 = vst [vmem:[#allocation2 + $0x30] sm:$0xf] %v297_v59 }
  0xf9   : > { %v331_v62 = vld [vmem:[#allocation2 + $0x28] sm:$0xff] }
  0xfa   : > { %v304_v60 = vpop.permute.xlu1 %303 }
  0xfb   : > { %v310_v61 = vsel %vm309_vm6, %v304_v60, %v643_v50 }
  0xfc   : > { %314 = vst [vmem:[#allocation2 + $0x30] sm:$0xf0] %v310_v61 }
  0xfd   : > { %v333_v63 = vld [vmem:[#allocation2 + $0x38] sm:$0xff] }
  0xfe   : > { %v339_v0 = vpack.c.bf16 %v333_v63, %v331_v62 }
  0xff   : > { %v330_v3 = vld [vmem:[#allocation2 + $0x20] sm:$0xff] }
 0x100   : > { %355 = vmatprep.subr.bf16.mxu0 %v339_v0 }
 0x103   : > { %v332_v4 = vld [vmem:[#allocation2 + $0x30] sm:$0xff] }
 0x104   : > { %v338_v7 = vpack.c.bf16 %v332_v4, %v330_v3 }
 0x106   : > { %356 = vmatpush1.bf16.msra.mxu0 %v338_v7 }
 0x107   : > { %523 = vmatprep.subr.msk.bf16.mxu0 %vm346_vm7, %v341_v5  ;;  %v397_v10 = vpop.permute.xlu0 %396 }
 0x10a   : > { %358 = vmatpush1.bf16.msra.mxu0 %v348_v8 }
 0x10b   : > { %v403_v12 = vpop.permute.xlu1 %402 }
 0x10d   : > { %524 = vmatmul.mubr.msk.bf16.vlgmr.msra.gmra.mrb[0].mxu0 %vm342_vm8, %v325_v9 }
 0x1e0   : > { %v387_v11 = vpop.f32.mrb[0].mxu0 }
 0x1e1   : > { %v399_v13 = vmul.f32 %v397_v10, %v387_v11  ;;  %v389_v14 = vpop.f32.mrb[1].mxu0 }
 0x1e2   : > { %v400_v15 = vmul.f32 %v397_v10, %v389_v14  ;;  %v391_v16 = vpop.f32.mrb[2].mxu0 }
 0x1e3   : > { %v405_v17 = vadd.f32 %v403_v12, %v399_v13  ;;  %v392_v18 = vpop.f32.mrb[3].mxu0 }
 0x1e4   : > { %v406_v19 = vadd.f32 %v403_v12, %v400_v15 }
 0x1e5   : > { %407 = vst [vmem:[%s211_s6] sm:$0xff] %v405_v17 }
 0x1e6   : > { %408 = vst [vmem:[%s211_s6 + $0x8] sm:$0xff] %v406_v19 }
 0x1e7   : > { %747 = shalt.err (!%p744_p7)
}
 0x1e8   : > { %s748_s27 = scalar_lea.hbm %s1031_s24, 256  ;;  %s752_s17 = scalar_lea.hbm %s1078_s3, 512 }
 0x1e9   : > { %p749_p10 = scmp.ne.s32.totalorder %s1031_s24, %s748_s27  ;;  %p753_p0 = scmp.lt.u32.totalorder %s1031_s24, %s1078_s3 }
 0x1ea   : > { %p754_p9 = scmp.lt.u32.totalorder %s752_s17, %s748_s27  ;;  %p756_p2 = scmp.lt.u32.totalorder %s748_s27, %s1031_s24 }
 0x1eb   : > { %p750_p13 = pnand %p749_p10, %p958_p6 }
 0x1ec   : > { %p755_p12 = por %p754_p9, %p753_p0 }
 0x1ed   : > { %p751_p5 = pneg %p750_p13 }
 0x1ee   : > { %p757_p1 = por %p756_p2, %p755_p12 }
 0x1f0   : > { %p758_p4 = pnand %p757_p1, %p751_p5 }
 0x1f2   : > { %761 = shalt.err (!%p758_p4)
}
 0x1f3   : > { %544 = dma.vmem_to_hbm [thread:$0]  (%p958_p6), %s1033_s8, 256, %s1031_s24, %s410_s16  }
 0x1f4 PF: > { %s436_s22 = sand.u32 1, %s792_s12   ;;  %p1093_p8 = scmp.ne.s32.totalorder %s1083_s19, 0 }
 0x1f5   : > { %p1094_p11 = scmp.ge.s32.totalorder %s804_s15, 2  ;;  %s437_s4 = scalar_lea.sflag [#allocation5], %s436_s22 }
 0x1f7   : > { %p558_p3 = pnand %p1094_p11, %p1093_p8 }
 0x1f9   : > { %787 = dma.done.wait (!%p558_p3), %s437_s4, 256  }
 0x1fa   : > { %789 = vsyncadd (!%p558_p3), %s437_s4, 4294967040  ;;  %p17_p7 = scmp.ge.s32.totalorder %s895_s26, 4   ;;  %s1095_s12 = smov %s796_s13 }
 0x1fb   : > { %s1096_s13 = smov %s800_s14  ;;  %s1097_s14 = smov %s954_s25 }
 0x1fc   : > { %s1098_s15 = smov %s895_s26  ;;  %19 = sbr.rel (!%p17_p7) target bundleno = 6 (0x6), region = 85 }
 0x203   :  { %442 = vsyncpa [#allocation4], 1 }
 0x204   :  { %444 = vsyncpa [#allocation4 + $0x1], 1 }
 0x205   :  { %445 = vsyncpa [#allocation7], 1 }
 0x206   :  { %446 = vsyncpa [#allocation5], 1 }
 0x207   :  { %448 = vsyncpa [#allocation5 + $0x1], 1 }

</bundles_post_ra>
